<compile_context>
chip_gen: v7x
topology: tpu7x:2x2x1
jax: 0.10.0
libtpu: 0.0.40
codegen_flags: <defaults>
</compile_context>

<pallas_src>
import jax
import jax.numpy as jnp
from jax.experimental import pallas as pl
from jax.experimental.pallas import tpu as pltpu


def _endhead_kernel(x_ref, w1_ref, b1_ref, w2_ref, b2_ref, out_ref, acc_ref):
    # x_ref : (tb, tn, H)   w1_ref: (1, H)    b1_ref: (1, 1) in SMEM
    # w2_ref: (tn, Out)     b2_ref: (1, Out)  out_ref: (tb, Out)
    # acc_ref: (tb, Out) f32 scratch, accumulated over the N (k) grid axis.
    k = pl.program_id(1)

    @pl.when(k == 0)
    def _init():
        acc_ref[...] = jnp.zeros_like(acc_ref)

    # linear_1: contract the H (lane) axis; accumulate in f32.
    x = x_ref[...]                                    # (tb, tn, H) native dtype
    w1 = w1_ref[...]                                  # (1, H)
    t = jnp.sum(x * w1[None, :, :], axis=-1, dtype=jnp.float32)   # (tb, tn)
    t = t + b1_ref[0, 0]                              # scalar bias from SMEM

    # Exact GELU (matches torch.nn.GELU default): 0.5*t*(1+erf(t/sqrt(2)))
    g = 0.5 * t * (1.0 + jax.lax.erf(t * 0.7071067811865476))     # (tb, tn) f32

    # linear_2 partial: (tb, tn) @ (tn, Out) on the MXU, accumulated over k.
    acc_ref[...] += jnp.dot(g, w2_ref[...], preferred_element_type=jnp.float32)

    @pl.when(k == pl.num_programs(1) - 1)
    def _finalize():
        out_ref[...] = (acc_ref[...] + b2_ref[...]).astype(out_ref.dtype)


def _choose_tb(bs: int) -> int:
    # out block is (tb, Out): tb must be a multiple of 8 or equal to BS.
    for c in (32, 16, 8):
        if bs % c == 0:
            return c
    return bs


def _choose_tn(n: int, cap: int) -> int:
    # x block is (tb, tn, H): tn must be a multiple of 8 or equal to N.
    if n <= cap:
        return n
    for step in (256, 8):            # prefer MXU/lane-friendly multiples of 256
        d = (cap // step) * step
        while d >= step:
            if n % d == 0:
                return d
            d -= step
    return n                         # no aligned divisor: fall back to full axis


def end_head(x, w1, b1, w2, b2):
    """x: (BS, N, H), w1: (H,), b1: scalar, w2: (N, Out), b2: (Out,)."""
    bs, n, h = x.shape
    dim_out = w2.shape[1]

    tb = _choose_tb(bs)
    itemsize = jnp.dtype(x.dtype).itemsize
    lane_h = -(-h // 128) * 128                 # VMEM lane padding of the H axis
    x_tile_budget = 8 * 1024 * 1024             # per buffer; x2 for double-buffering
    cap = max(8, x_tile_budget // (tb * lane_h * itemsize))
    tn = _choose_tn(n, cap)
    grid = (bs // tb, n // tn)

    kernel = pl.pallas_call(
        _endhead_kernel,
        out_shape=jax.ShapeDtypeStruct((bs, dim_out), x.dtype),
        grid_spec=pltpu.PrefetchScalarGridSpec(
            num_scalar_prefetch=0,
            grid=grid,
            in_specs=[
                pl.BlockSpec((tb, tn, h), lambda b, k: (b, k, 0)),      # x tile
                pl.BlockSpec((1, h), lambda b, k: (0, 0)),              # w1 (resident)
                pl.BlockSpec(memory_space=pltpu.MemorySpace.SMEM),      # b1 scalar
                pl.BlockSpec((tn, dim_out), lambda b, k: (k, 0)),       # w2 tile
                pl.BlockSpec((1, dim_out), lambda b, k: (0, 0)),        # b2 (resident)
            ],
            out_specs=pl.BlockSpec((tb, dim_out), lambda b, k: (b, 0)),
            scratch_shapes=[pltpu.VMEM((tb, dim_out), jnp.float32)],
        ),
        compiler_params=pltpu.CompilerParams(
            dimension_semantics=("parallel", "arbitrary"),
            vmem_limit_bytes=32 * 1024 * 1024,
        ),
    )
    return kernel(
        x,
        w1.reshape(1, h).astype(x.dtype),
        b1.reshape(1, 1).astype(jnp.float32),
        w2.astype(jnp.float32),
        b2.reshape(1, dim_out).astype(jnp.float32),
    )


def end_head_ref(x, w1, b1, w2, b2):
    t = jnp.einsum("bnh,h->bn", x.astype(jnp.float32), w1) + b1
    g = 0.5 * t * (1.0 + jax.lax.erf(t / jnp.sqrt(2.0)))
    return g @ w2 + b2


if __name__ == "__main__":
    # Small shapes consistent with the module: BS x N_tokens x H_dim -> BS x Out
    BS, N_TOKENS, H_DIM, DIM_OUT = 2, 8, 32, 16

    key = jax.random.PRNGKey(0)
    kx, kw1, kb1, kw2, kb2 = jax.random.split(key, 5)

    x = jax.random.normal(kx, (BS, N_TOKENS, H_DIM), dtype=jnp.float32)
    # linear_1: nn.Linear(hidden_dim, 1)  -> weight (1, H), bias (1,)
    w1 = jax.random.normal(kw1, (H_DIM,), dtype=jnp.float32) * 0.1
    b1 = jax.random.normal(kb1, (), dtype=jnp.float32) * 0.1
    # linear_2: nn.Linear(num_tokens, dim_out) -> weight (Out, N) -> passed as (N, Out)
    w2 = jax.random.normal(kw2, (N_TOKENS, DIM_OUT), dtype=jnp.float32) * 0.1
    b2 = jax.random.normal(kb2, (DIM_OUT,), dtype=jnp.float32) * 0.1

    y = end_head(x, w1, b1, w2, b2)
    jax.block_until_ready(y)

    y_ref = end_head_ref(x, w1, b1, w2, b2)
    assert y.shape == (BS, DIM_OUT)
    assert jnp.allclose(y, y_ref, atol=1e-5, rtol=1e-5), "mismatch vs reference"

    print("KERNEL_OK")
</pallas_src>

<mosaic_0001>
module attributes {stable_mosaic.version = 11 : i64} {
  func.func @_endhead_kernel(%arg0: i32, %arg1: i32, %arg2: memref<2x8x32xf32, #tpu.memory_space<vmem>>, %arg3: memref<1x32xf32, #tpu.memory_space<vmem>>, %arg4: memref<1x1xf32, #tpu.memory_space<smem>>, %arg5: memref<8x16xf32, #tpu.memory_space<vmem>>, %arg6: memref<1x16xf32, #tpu.memory_space<vmem>>, %arg7: memref<2x16xf32, #tpu.memory_space<vmem>>, %arg8: memref<2x16xf32, #tpu.memory_space<vmem>>) attributes {dimension_semantics = [#tpu.dimension_semantics<parallel>, #tpu.dimension_semantics<arbitrary>], iteration_bounds = array<i64: 1, 1>, scalar_prefetch = 0 : i64, scratch_operands = 1 : i64, tpu.core_type = #tpu.core_type<tc>, window_params = [{transform_indices = @transform_0, window_bounds = array<i64: 2, 8, 32>}, {pipeline_mode = #tpu.pipeline_mode<synchronous>, transform_indices = @transform_1, window_bounds = array<i64: 1, 32>}, {transform_indices = @transform_2, window_bounds = array<i64: 1, 1>}, {transform_indices = @transform_3, window_bounds = array<i64: 8, 16>}, {pipeline_mode = #tpu.pipeline_mode<synchronous>, transform_indices = @transform_4, window_bounds = array<i64: 1, 16>}, {transform_indices = @transform_5, window_bounds = array<i64: 2, 16>}]} {
    %c0_i32 = arith.constant 0 : i32
    %0 = arith.cmpi eq, %arg1, %c0_i32 : i32
    %1 = arith.extui %0 : i1 to i32
    %c0_i32_0 = arith.constant 0 : i32
    %2 = arith.cmpi ne, %1, %c0_i32_0 : i32
    scf.if %2 {
      %cst_19 = arith.constant 0.000000e+00 : f32
      %28 = vector.broadcast %cst_19 : f32 to vector<2x16xf32>
      %c0_20 = arith.constant 0 : index
      %c0_21 = arith.constant 0 : index
      %29 = vector.load %arg8[%c0_20, %c0_21] : memref<2x16xf32, #tpu.memory_space<vmem>>, vector<2x16xf32>
      tpu.vector_store %arg8[%c0_20, %c0_21], %28 {strides = array<i32>} : memref<2x16xf32, #tpu.memory_space<vmem>>, vector<2x16xf32>,
    } else {
    }
    %c0 = arith.constant 0 : index
    %c0_1 = arith.constant 0 : index
    %c0_2 = arith.constant 0 : index
    %3 = vector.load %arg2[%c0, %c0_1, %c0_2] : memref<2x8x32xf32, #tpu.memory_space<vmem>>, vector<2x8x32xf32>
    %c0_3 = arith.constant 0 : index
    %c0_4 = arith.constant 0 : index
    %4 = vector.load %arg3[%c0_3, %c0_4] : memref<1x32xf32, #tpu.memory_space<vmem>>, vector<1x32xf32>
    %5 = vector.shape_cast %4 : vector<1x32xf32> to vector<1x1x32xf32>
    %6 = vector.broadcast %5 : vector<1x1x32xf32> to vector<2x8x32xf32>
    %7 = arith.mulf %3, %6 : vector<2x8x32xf32>
    %cst = arith.constant dense<0.000000e+00> : vector<2x8xf32>
    %8 = vector.multi_reduction <add>, %7, %cst [2] : vector<2x8x32xf32> to vector<2x8xf32>
    %c0_5 = arith.constant 0 : index
    %c0_6 = arith.constant 0 : index
    %9 = memref.load %arg4[%c0_5, %c0_6] : memref<1x1xf32, #tpu.memory_space<smem>>
    %10 = vector.broadcast %9 : f32 to vector<2x8xf32>
    %11 = arith.addf %8, %10 : vector<2x8xf32>
    %cst_7 = arith.constant 5.000000e-01 : f32
    %12 = vector.broadcast %cst_7 : f32 to vector<2x8xf32>
    %13 = arith.mulf %12, %11 : vector<2x8xf32>
    %cst_8 = arith.constant 0.707106769 : f32
    %14 = vector.broadcast %cst_8 : f32 to vector<2x8xf32>
    %15 = arith.mulf %11, %14 : vector<2x8xf32>
    %16 = math.erf %15 : vector<2x8xf32>
    %cst_9 = arith.constant 1.000000e+00 : f32
    %17 = vector.broadcast %cst_9 : f32 to vector<2x8xf32>
    %18 = arith.addf %17, %16 : vector<2x8xf32>
    %19 = arith.mulf %13, %18 : vector<2x8xf32>
    %c0_10 = arith.constant 0 : index
    %c0_11 = arith.constant 0 : index
    %20 = vector.load %arg8[%c0_10, %c0_11] : memref<2x16xf32, #tpu.memory_space<vmem>>, vector<2x16xf32>
    %c0_12 = arith.constant 0 : index
    %c0_13 = arith.constant 0 : index
    %21 = vector.load %arg5[%c0_12, %c0_13] : memref<8x16xf32, #tpu.memory_space<vmem>>, vector<8x16xf32>
    %cst_14 = arith.constant dense<0.000000e+00> : vector<2x16xf32>
    %22 = tpu.matmul %19, %21, %cst_14 {dimension_numbers = #tpu.dot_dimension_numbers<[1], [0], [0], [1], [0, 0, 1, 1], [], []>} : vector<2x8xf32>, vector<8x16xf32>, vector<2x16xf32> -> vector<2x16xf32>
    %23 = arith.addf %20, %22 : vector<2x16xf32>
    %c0_15 = arith.constant 0 : index
    %c0_16 = arith.constant 0 : index
    %24 = vector.load %arg8[%c0_15, %c0_16] : memref<2x16xf32, #tpu.memory_space<vmem>>, vector<2x16xf32>
    tpu.vector_store %arg8[%c0_15, %c0_16], %23 {strides = array<i32>} : memref<2x16xf32, #tpu.memory_space<vmem>>, vector<2x16xf32>,
    %c0_i32_17 = arith.constant 0 : i32
    %25 = arith.cmpi eq, %arg1, %c0_i32_17 : i32
    %26 = arith.extui %25 : i1 to i32
    %c0_i32_18 = arith.constant 0 : i32
    %27 = arith.cmpi ne, %26, %c0_i32_18 : i32
    scf.if %27 {
      %c0_19 = arith.constant 0 : index
      %c0_20 = arith.constant 0 : index
      %28 = vector.load %arg8[%c0_19, %c0_20] : memref<2x16xf32, #tpu.memory_space<vmem>>, vector<2x16xf32>
      %c0_21 = arith.constant 0 : index
      %c0_22 = arith.constant 0 : index
      %29 = vector.load %arg6[%c0_21, %c0_22] : memref<1x16xf32, #tpu.memory_space<vmem>>, vector<1x16xf32>
      %30 = vector.broadcast %29 : vector<1x16xf32> to vector<2x16xf32>
      %31 = arith.addf %28, %30 : vector<2x16xf32>
      %c0_23 = arith.constant 0 : index
      %c0_24 = arith.constant 0 : index
      %32 = vector.load %arg7[%c0_23, %c0_24] : memref<2x16xf32, #tpu.memory_space<vmem>>, vector<2x16xf32>
      tpu.vector_store %arg7[%c0_23, %c0_24], %31 {strides = array<i32>} : memref<2x16xf32, #tpu.memory_space<vmem>>, vector<2x16xf32>,
    } else {
    }
    return
  }
  func.func @transform_0(%arg0: i32, %arg1: i32) -> (i32, i32, i32) {
    %c0_i32 = arith.constant 0 : i32
    %c0_i32_0 = arith.constant 0 : i32
    return %arg0, %arg1, %c0_i32 : i32, i32, i32
  }
  func.func @transform_1(%arg0: i32, %arg1: i32) -> (i32, i32) {
    %c0_i32 = arith.constant 0 : i32
    %c0_i32_0 = arith.constant 0 : i32
    %c0_i32_1 = arith.constant 0 : i32
    return %c0_i32, %c0_i32_0 : i32, i32
  }
  func.func @transform_2(%arg0: i32, %arg1: i32) -> (i32, i32) {
    %c0_i32 = arith.constant 0 : i32
    %c0_i32_0 = arith.constant 0 : i32
    %c0_i32_1 = arith.constant 0 : i32
    return %c0_i32, %c0_i32_0 : i32, i32
  }
  func.func @transform_3(%arg0: i32, %arg1: i32) -> (i32, i32) {
    %c0_i32 = arith.constant 0 : i32
    %c0_i32_0 = arith.constant 0 : i32
    return %arg1, %c0_i32 : i32, i32
  }
  func.func @transform_4(%arg0: i32, %arg1: i32) -> (i32, i32) {
    %c0_i32 = arith.constant 0 : i32
    %c0_i32_0 = arith.constant 0 : i32
    %c0_i32_1 = arith.constant 0 : i32
    return %c0_i32, %c0_i32_0 : i32, i32
  }
  func.func @transform_5(%arg0: i32, %arg1: i32) -> (i32, i32) {
    %c0_i32 = arith.constant 0 : i32
    %c0_i32_0 = arith.constant 0 : i32
    return %arg0, %c0_i32 : i32, i32
  }
}

</mosaic_0001>

<bundles_post_ra>
// kernel: tpu_custom_call.1
= control target key start
LH: loop header
LB: loop body
LE: loop exit
PB: predicated region body
PF: predicated region fallthrough
CT: control target
= control target key end

     0   :  { %11 = vsyncpa [#allocation5], 0  ;;  %s337_s0 = inlined_call_operand.hbm [shape: f32[2,8,32], index: 0, kind: input, shape index: {}]   ;;  %s338_s1 = inlined_call_operand.vmem [shape: f32[1,32], index: 1, kind: input, shape index: {}]   ;;  %s339_s2 = inlined_call_operand.<no memory space> [shape: f32[1,1], index: 2, kind: input, shape index: {}]   ;;  %s340_s3 = inlined_call_operand.vmem [shape: f32[8,16], index: 3, kind: input, shape index: {}]   ;;  %s341_s4 = inlined_call_operand.vmem [shape: f32[1,16], index: 4, kind: input, shape index: {}]   ;;  %s342_s5 = inlined_call_operand.hbm [shape: f32[2,16], index: 5, kind: output, shape index: {}]  }
   0x1   :  { %12 = vsyncpa [#allocation6], 0  ;;  %s262_s18 = smov [#allocation4]   ;;  %s214_s22 = scalar_lea.hbm %s337_s0, 256 }
   0x2   :  { %s18_s19 = sshll.u32 %s262_s18, 4  ;;  %p215_p0 = scmp.ne.s32.totalorder %s337_s0, %s214_s22  ;;  %s19_s19 = int_to_ptr.vmem [resolvable:$true] %s18_s19 }
   0x3   :  { %p218_p1 = scmp.lt.u32.totalorder %s214_s22, %s337_s0 }
   0x5   :  { %p220_p2 = pnand %p218_p1, %p215_p0 }
   0x7   :  { %223 = shalt.err (!%p220_p2)
}
   0x8   :  { %s224_s27 = scalar_lea.vmem %s19_s19, 256  ;;  %p229_p4 = scmp.lt.s32.totalorder %s19_s19, %s19_s19 }
   0x9   :  { %p225_p3 = scmp.ne.s32.totalorder %s19_s19, %s224_s27  ;;  %p230_p5 = scmp.lt.s32.totalorder %s224_s27, %s224_s27 }
   0xb   :  { %p231_p6 = por %p230_p5, %p229_p4 }
   0xd   :  { %p232_p7 = pnand %p231_p6, %p225_p3 }
   0xf   :  { %235 = shalt.err (!%p232_p7)
}
  0x10   :  { %s263_s28 = smov 128   ;;  %s264_s29 = smov 8  }
  0x11   :  { %24 = dma.hbm_to_vmem [thread:$0]  %s337_s0, 256, %s19_s19, [#allocation5], %s263_s28, %s263_s28, %s264_s29  }
  0x12   :  { %258 = dma.done.wait [#allocation5], 256  }
  0x13   :  { %259 = vsyncadd [#allocation5], 4294967040  ;;  %v42_v0 = vld [vmem:[#allocation4] sm:$0xff]  ;;  %v194_v1 = vld [vmem:[%s338_s1] ss:$0 sm:$0xff]  ;;  %vm53_vm0 = vcmask 261120   ;;  %v61_v9 = vstv %s339_s2  ;;  %v78_v16 = vlaneseq }
  0x14   :  { %v43_v2 = vld [vmem:[#allocation4 + $0x8] sm:$0xff]  ;;  %v51_v3 = vmul.f32 %v194_v1, %v42_v0  ;;  %vm40_vm1 = vcmask 123904   ;;  %v75_v7 = vld [vmem:[%s340_s3] sm:$0xff]  ;;  %v265_v8 = vmov 0.0   ;;  %vm266_vm2 = vmmov 0   ;;  %s267_s11 = smov [#allocation7]  }
  0x15   :  { %v52_v4 = vmul.f32 %v194_v1, %v43_v2  ;;  %41 = vst.msk [vmem:[#allocation2] sm:$0x3] %vm40_vm1, %v265_v8  ;;  %199 = vmatprep.subr.mxu0 %v265_v8  ;;  %201 = vmatprep.mubr.msk.f32.mxu0 %vm266_vm2, %v265_v8  ;;  %v79_v18 = vand.u32 127, %v78_v16  ;;  %v81_v19 = vshrl.u32 %v78_v16, 7  ;;  %vm88_vm3 = vcmask 1041409   ;;  %s185_s12 = sshll.u32 %s267_s11, 4  ;;  %s186_s12 = int_to_ptr.vmem [resolvable:$true] %s185_s12 }
  0x16   :  { %v54_v5 = vsel %vm53_vm0, %v51_v3, 0.0  ;;  %200 = vmatpush3.msra.mxu0 %v75_v7  ;;  %vm90_vm4 = vcmask 64512   ;;  %v196_v35 = vld [vmem:[%s341_s4] ss:$0 sm:$0xff]  ;;  %s236_s13 = scalar_lea.vmem %s186_s12, 32  ;;  %p241_p9 = scmp.lt.s32.totalorder %s186_s12, %s186_s12 }
  0x17   :  { %55 = vadd.xlane.f32.xlu0 %v54_v5  ;;  %v57_v6 = vsel %vm53_vm0, %v52_v4, 0.0  ;;  %v82_v23 = vsub.s32 %v79_v18, %v81_v19  ;;  %p237_p8 = scmp.ne.s32.totalorder %s186_s12, %s236_s13  ;;  %p242_p10 = scmp.lt.s32.totalorder %s236_s13, %s236_s13 }
  0x19   :  { %p243_p11 = por %p242_p10, %p241_p9 }
  0x1b   :  { %58 = vadd.xlane.f32.xlu0 %v57_v6  ;;  %p244_p12 = pnand %p243_p11, %p237_p8 }
  0x1c   :  { %v74_v31 = vld [vmem:[#allocation2] sm:$0x3] }
  0xa4   :  { %v56_v10 = vpop.xlane.xlu0 %55 }
  0xa5   :  { %v62_v11 = vadd.f32 %v61_v9, %v56_v10 }
  0xa7   :  { %v66_v12 = vmul.f32 0.70710677, %v62_v11  ;;  %v64_v21 = vmul.f32 0.5, %v62_v11 }
  0xa8   :  { %v59_v13 = vpop.xlane.xlu0 %58 }
  0xa9   :  { %210 = verf.f32 %v66_v12  ;;  %v63_v14 = vadd.f32 %v61_v9, %v59_v13 }
  0xab   :  { %v67_v15 = vmul.f32 0.70710677, %v63_v14  ;;  %v65_v25 = vmul.f32 0.5, %v63_v14 }
  0xad   :  { %212 = verf.f32 %v67_v15 }
  0xb3   :  { %v211_v17 = vpop.eup %210 }
  0xb4   :  { %v70_v20 = vadd.f32 1.0, %v211_v17 }
  0xb6   :  { %v72_v24 = vmul.f32 %v70_v20, %v64_v21 }
  0xb7   :  { %v213_v22 = vpop.eup %212 }
  0xb8   :  { %v71_v26 = vadd.f32 1.0, %v213_v22  ;;  %v83_v28 = vrot.slane %v72_v24, %v82_v23 }
  0xba   :  { %v73_v27 = vmul.f32 %v71_v26, %v65_v25 }
  0xbc   :  { %v87_v29 = vrot.slane %v73_v27, %v82_v23 }
  0xbe   :  { %v89_v30 = vsel %vm88_vm3, %v87_v29, %v83_v28 }
  0xbf   :  { %202 = vmatmul.mubr.msk.f32.vlgmr.msra.gmra.mrb[0].mxu0 %vm90_vm4, %v89_v30 }
 0x192   :  { %v159_v32 = vpop.f32.mrb[0].mxu0 }
 0x193   :  { %v163_v33 = vadd.f32 %v159_v32, %v74_v31  ;;  %v203_v34 = vpop.f32.mrb[1].mxu0 }
 0x195   :  { %165 = vst.msk [vmem:[#allocation2] sm:$0x3] %vm40_vm1, %v163_v33 }
 0x19c   :  { %v169_v36 = vld [vmem:[#allocation2] sm:$0x3] }
 0x19d   :  { %v177_v37 = vadd.f32 %v196_v35, %v169_v36 }
 0x19f   :  { %178 = vst.msk [vmem:[#allocation7] sm:$0x3] %vm40_vm1, %v177_v37 }
 0x1a0   :  { %247 = shalt.err (!%p244_p12)
}
 0x1a1   :  { %s248_s16 = scalar_lea.hbm %s342_s5, 32 }
 0x1a2   :  { %p249_p13 = scmp.ne.s32.totalorder %s342_s5, %s248_s16  ;;  %p252_p0 = scmp.lt.u32.totalorder %s248_s16, %s342_s5 }
 0x1a4   :  { %p254_p1 = pnand %p252_p0, %p249_p13 }
 0x1a6   :  { %257 = shalt.err (!%p254_p1)
}
 0x1a7   :  { %188 = dma.vmem_to_hbm [thread:$0]  %s186_s12, 32, %s342_s5, [#allocation6]  }
 0x1a8   :  { %260 = dma.done.wait [#allocation6], 32  }
 0x1a9   :  { %261 = vsyncadd [#allocation6], 4294967264 }
 0x1aa   :  { %192 = vsyncpa [#allocation5], 1 }
 0x1ab   :  { %193 = vsyncpa [#allocation6], 1 }

</bundles_post_ra>
